<compile_context>
chip_gen: v5e
topology: v5e:2x2
jax: 0.10.0
libtpu: 0.0.40
codegen_flags: <defaults>
</compile_context>

<pallas_src>
import numpy as np
import jax
import jax.numpy as jnp
from jax import lax
from jax.experimental import pallas as pl
from jax.experimental.pallas import tpu as pltpu

# ---- problem sizes (small, consistent with the module) ----
N = 2           # batch
CIN = 4         # conv.in_channels
COUT = 8        # conv.out_channels
H = W = 16      # spatial
KH = KW = 3     # kernel size
P = 1           # padding
BOTTLENECK_RATIO = 2
WIDTH = COUT // BOTTLENECK_RATIO      # adapter width (= groups of adapter.conv1)
CPG = COUT // WIDTH                   # input channels per group of adapter.conv1

MROWS = N * H         # 32  : batch folded into the matmul M dimension
LC_IN = W * CIN       # 64  : lanes of a flattened input row
LC_OUT = W * COUT     # 128 : lanes of a flattened conv/output row (lane-dense)
LC_MID = W * WIDTH    # 64  : lanes of a flattened adapter-width row

# TODO(synk): weight_standardization=True (Conv2dWS) path not implemented; module default is False.


def fused_kernel(x_ref, wb1_ref, bias_ref, wb2_ref, wb3_ref, se_ref, out_ref):
    def conv3x3(rows, wb_ref):
        # rows: (MROWS, W*C) f32.  Vertical taps via XLU sublane rolls; the row mask provides the
        # vertical zero padding and isolates batch items (row i with i % H == 0 has no row above,
        # i % H == H-1 none below).  Horizontal taps + horizontal zero padding live in the band
        # structure of the host-built weight K-slices.  Three accumulating bf16 matmuls, f32 acc.
        ridx = lax.broadcasted_iota(jnp.int32, rows.shape, 0)
        up = jnp.where(ridx % H == 0, 0.0, pltpu.roll(rows, 1, axis=0))              # rows i-1
        dn = jnp.where(ridx % H == H - 1, 0.0, pltpu.roll(rows, MROWS - 1, axis=0))  # rows i+1
        acc = jnp.dot(up.astype(jnp.bfloat16), wb_ref[0],
                      preferred_element_type=jnp.float32)
        acc = acc + jnp.dot(rows.astype(jnp.bfloat16), wb_ref[1],
                            preferred_element_type=jnp.float32)
        acc = acc + jnp.dot(dn.astype(jnp.bfloat16), wb_ref[2],
                            preferred_element_type=jnp.float32)
        return acc

    x = x_ref[...]                                              # (MROWS, W*CIN) f32

    # ---- main conv (3x3, pad 1, bias) -> lane-dense (32, 128) f32 ----
    conv = conv3x3(x, wb1_ref) + bias_ref[...]

    # ---- adapter.conv1 (grouped 3x3, pad 1) + act1 ----
    a = jnp.maximum(conv3x3(conv, wb2_ref), 0.0)                # (32, 64)

    # ---- adapter.conv2 (1x1, block-diagonal weight) + act2, then se scale ----
    # (se can be negative -> must NOT be folded into wb3 / moved before the ReLU)
    a = jnp.dot(a.astype(jnp.bfloat16), wb3_ref[...], preferred_element_type=jnp.float32)
    a = jnp.maximum(a, 0.0) * se_ref[...]                       # (32, 128)

    # ---- residual add, lane-dense store ----
    out_ref[...] = (conv + a).astype(out_ref.dtype)


@jax.jit
def sequential_conv_adapter(x_nchw, wb1, bias_w, wb2, wb3, se_w):
    """x_nchw: (N, CIN, H, W) f32.  Returns (N, COUT, H, W) f32."""
    # lane-dense row layout with batch folded into M: (N*H, W*CIN)
    x_rows = jnp.transpose(x_nchw, (0, 2, 3, 1)).reshape(MROWS, LC_IN)

    # No grid: the whole problem is a single invocation; every operand is a whole-array VMEM ref
    # (~0.2 MiB total, far under the scoped VMEM default on v5e/v6e/v7x).
    out_rows = pl.pallas_call(
        fused_kernel,
        out_shape=jax.ShapeDtypeStruct((MROWS, LC_OUT), jnp.float32),
    )(x_rows, wb1, bias_w, wb2, wb3, se_w)

    # back to PyTorch NCHW
    return jnp.transpose(out_rows.reshape(N, H, W, COUT), (0, 3, 1, 2))


# ---------------- host-side weight glue (setup-time only) ----------------

def build_banded_3x3(w_oihw, cin, cout):
    """Dense OIHW 3x3 weight -> (KH, W*cin, W*cout) banded K-slices (one per vertical tap).

    wb[kh, jp*cin + ci, j*cout + co] = w[co, ci, kh, jp - j + 1] inside the band, zero elsewhere
    (the zeros also implement the horizontal zero-padding).  Returned in bf16 (MXU operands).
    """
    w_np = np.asarray(w_oihw, np.float32)
    wb = np.zeros((KH, W * cin, W * cout), np.float32)
    for kh in range(KH):
        for j in range(W):                      # output column
            for kw in range(KW):
                jp = j + kw - P                 # input column
                if 0 <= jp < W:
                    wb[kh, jp * cin:(jp + 1) * cin, j * cout:(j + 1) * cout] = \
                        w_np[:, :, kh, kw].T
    return jnp.asarray(wb, jnp.bfloat16)


def reference_forward(x_nchw, w_conv_t, b_conv, w1_g, w2_t, se):
    """Pure-JAX reference (lax.conv, f32 HIGHEST), NCHW in / NCHW out."""
    x = jnp.transpose(x_nchw, (0, 2, 3, 1))
    conv = lax.conv_general_dilated(
        x, jnp.transpose(w_conv_t, (2, 3, 1, 0)), (1, 1), ((P, P), (P, P)),
        dimension_numbers=('NHWC', 'HWIO', 'NHWC'),
        precision=lax.Precision.HIGHEST) + b_conv
    a = lax.conv_general_dilated(
        conv, jnp.transpose(w1_g, (2, 3, 1, 0)), (1, 1), ((P, P), (P, P)),
        dimension_numbers=('NHWC', 'HWIO', 'NHWC'), feature_group_count=WIDTH,
        precision=lax.Precision.HIGHEST)
    a = jnp.maximum(a, 0.0)
    a = lax.conv_general_dilated(
        a, jnp.transpose(w2_t, (2, 3, 1, 0)), (1, 1), 'VALID',
        dimension_numbers=('NHWC', 'HWIO', 'NHWC'),
        precision=lax.Precision.HIGHEST)
    a = jnp.maximum(a, 0.0) * se
    return jnp.transpose(conv + a, (0, 3, 1, 2))


if __name__ == "__main__":
    key = jax.random.PRNGKey(0)
    k0, k1, k2, k3, k4, k5 = jax.random.split(key, 6)

    # deterministic parameter init (PyTorch layouts), float32
    w_conv_t = jax.random.normal(k0, (COUT, CIN, KH, KW), jnp.float32) * 0.1   # conv.weight
    b_conv = jax.random.normal(k1, (COUT,), jnp.float32) * 0.1                 # conv.bias
    w1_g = jax.random.normal(k2, (WIDTH, CPG, KH, KW), jnp.float32) * 0.1      # adapter.conv1 (grouped)
    w2_t = jax.random.normal(k3, (COUT, WIDTH, 1, 1), jnp.float32) * 0.1       # adapter.conv2 (1x1)
    # NOTE: PyTorch initializes `se` to zeros (adapter branch starts dead); we use a deterministic
    # non-zero init so the adapter path is actually exercised by the check.
    se = jax.random.normal(k4, (COUT,), jnp.float32) * 0.1
    x = jax.random.normal(k5, (N, CIN, H, W), jnp.float32)

    # --- kernel-side weight construction (bf16 MXU operands, f32 accumulation in-kernel) ---
    wb1 = build_banded_3x3(w_conv_t, CIN, COUT)                       # (3, 64, 128) bf16

    w1_dense = np.zeros((WIDTH, COUT, KH, KW), np.float32)            # grouped -> dense block-diag
    w1_np = np.asarray(w1_g, np.float32)
    for g in range(WIDTH):
        w1_dense[g, g * CPG:(g + 1) * CPG] = w1_np[g]
    # NOTE: wb2's K = 3*W*COUT = 384 is ~2x the true grouped-conv work (effective K = 3*W*CPG = 96);
    # accepted MXU waste at this size — a channel re-gather would cost more XLU work than it saves.
    wb2 = build_banded_3x3(w1_dense, COUT, WIDTH)                     # (3, 128, 64) bf16

    w2_np = np.asarray(w2_t, np.float32)[:, :, 0, 0]                  # (COUT, WIDTH)
    wb3_np = np.zeros((LC_MID, LC_OUT), np.float32)                   # block-diag 1x1 weight
    for j in range(W):
        wb3_np[j * WIDTH:(j + 1) * WIDTH, j * COUT:(j + 1) * COUT] = w2_np.T
    wb3 = jnp.asarray(wb3_np, jnp.bfloat16)                           # (64, 128) bf16

    # bias / se pre-broadcast to the full (MROWS, W*COUT) tile (f32 epilogue operands)
    bias_w = jnp.tile(b_conv[None, :], (MROWS, W))                    # (32, 128)
    se_w = jnp.tile(se[None, :], (MROWS, W))                          # (32, 128)

    out = sequential_conv_adapter(x, wb1, bias_w, wb2, wb3, se_w)
    out = jax.block_until_ready(out)

    ref = reference_forward(x, w_conv_t, b_conv, w1_g, w2_t, se)
    assert out.shape == (N, COUT, H, W)
    # bf16 matmul operands with f32 accumulation -> relaxed tolerance vs. the f32 reference.
    assert jnp.allclose(out, ref, atol=2e-2, rtol=2e-2), "mismatch vs pure-JAX reference"

    print("KERNEL_OK")
</pallas_src>

<mosaic_0001>
module attributes {stable_mosaic.version = 11 : i64} {
  func.func @fused_kernel(%arg0: memref<32x64xf32, #tpu.memory_space<vmem>>, %arg1: memref<3x64x128xbf16, #tpu.memory_space<vmem>>, %arg2: memref<32x128xf32, #tpu.memory_space<vmem>>, %arg3: memref<3x128x64xbf16, #tpu.memory_space<vmem>>, %arg4: memref<64x128xbf16, #tpu.memory_space<vmem>>, %arg5: memref<32x128xf32, #tpu.memory_space<vmem>>, %arg6: memref<32x128xf32, #tpu.memory_space<vmem>>) attributes {dimension_semantics = [], scalar_prefetch = 0 : i64, scratch_operands = 0 : i64, tpu.core_type = #tpu.core_type<tc>} {
    %c0 = arith.constant 0 : index
    %c0_0 = arith.constant 0 : index
    %0 = vector.load %arg0[%c0, %c0_0] : memref<32x64xf32, #tpu.memory_space<vmem>>, vector<32x64xf32>
    %1 = tpu.iota {dimensions = array<i32: 0>} : vector<32x64xi32>
    %c16_i32 = arith.constant 16 : i32
    %c0_i32 = arith.constant 0 : i32
    %2 = arith.cmpi eq, %c16_i32, %c0_i32 : i32
    %c1_i32 = arith.constant 1 : i32
    %3 = arith.select %2, %c1_i32, %c16_i32 : i32
    %4 = vector.broadcast %3 : i32 to vector<32x64xi32>
    %5 = arith.remsi %1, %4 : vector<32x64xi32>
    %c0_i32_1 = arith.constant 0 : i32
    %6 = vector.broadcast %c0_i32_1 : i32 to vector<32x64xi32>
    %7 = arith.cmpi ne, %5, %6 : vector<32x64xi32>
    %c0_i32_2 = arith.constant 0 : i32
    %8 = vector.broadcast %c0_i32_2 : i32 to vector<32x64xi32>
    %9 = arith.cmpi slt, %5, %8 : vector<32x64xi32>
    %c0_i32_3 = arith.constant 0 : i32
    %10 = arith.cmpi slt, %3, %c0_i32_3 : i32
    %11 = vector.broadcast %10 : i1 to vector<32x64xi1>
    %12 = vector.broadcast %11 : vector<32x64xi1> to vector<32x64xi1>
    %13 = arith.xori %9, %12 : vector<32x64xi1>
    %14 = arith.andi %13, %7 : vector<32x64xi1>
    %15 = vector.broadcast %3 : i32 to vector<32x64xi32>
    %16 = arith.addi %5, %15 : vector<32x64xi32>
    %17 = arith.select %14, %16, %5 : vector<32x64xi1>, vector<32x64xi32>
    %c0_i32_4 = arith.constant 0 : i32
    %18 = vector.broadcast %c0_i32_4 : i32 to vector<32x64xi32>
    %19 = arith.cmpi eq, %17, %18 : vector<32x64xi32>
    %c1_i32_5 = arith.constant 1 : i32
    %20 = tpu.dynamic_rotate %0 by %c1_i32_5 dim 0 : vector<32x64xf32>, i32 -> vector<32x64xf32>
    %cst = arith.constant 0.000000e+00 : f32
    %21 = vector.broadcast %cst : f32 to vector<32x64xf32>
    %22 = arith.select %19, %21, %20 : vector<32x64xi1>, vector<32x64xf32>
    %c16_i32_6 = arith.constant 16 : i32
    %c0_i32_7 = arith.constant 0 : i32
    %23 = arith.cmpi eq, %c16_i32_6, %c0_i32_7 : i32
    %c1_i32_8 = arith.constant 1 : i32
    %24 = arith.select %23, %c1_i32_8, %c16_i32_6 : i32
    %25 = vector.broadcast %24 : i32 to vector<32x64xi32>
    %26 = arith.remsi %1, %25 : vector<32x64xi32>
    %c0_i32_9 = arith.constant 0 : i32
    %27 = vector.broadcast %c0_i32_9 : i32 to vector<32x64xi32>
    %28 = arith.cmpi ne, %26, %27 : vector<32x64xi32>
    %c0_i32_10 = arith.constant 0 : i32
    %29 = vector.broadcast %c0_i32_10 : i32 to vector<32x64xi32>
    %30 = arith.cmpi slt, %26, %29 : vector<32x64xi32>
    %c0_i32_11 = arith.constant 0 : i32
    %31 = arith.cmpi slt, %24, %c0_i32_11 : i32
    %32 = vector.broadcast %31 : i1 to vector<32x64xi1>
    %33 = vector.broadcast %32 : vector<32x64xi1> to vector<32x64xi1>
    %34 = arith.xori %30, %33 : vector<32x64xi1>
    %35 = arith.andi %34, %28 : vector<32x64xi1>
    %36 = vector.broadcast %24 : i32 to vector<32x64xi32>
    %37 = arith.addi %26, %36 : vector<32x64xi32>
    %38 = arith.select %35, %37, %26 : vector<32x64xi1>, vector<32x64xi32>
    %c15_i32 = arith.constant 15 : i32
    %39 = vector.broadcast %c15_i32 : i32 to vector<32x64xi32>
    %40 = arith.cmpi eq, %38, %39 : vector<32x64xi32>
    %c31_i32 = arith.constant 31 : i32
    %41 = tpu.dynamic_rotate %0 by %c31_i32 dim 0 : vector<32x64xf32>, i32 -> vector<32x64xf32>
    %cst_12 = arith.constant 0.000000e+00 : f32
    %42 = vector.broadcast %cst_12 : f32 to vector<32x64xf32>
    %43 = arith.select %40, %42, %41 : vector<32x64xi1>, vector<32x64xf32>
    %44 = arith.truncf %22 : vector<32x64xf32> to vector<32x64xbf16>
    %c0_13 = arith.constant 0 : index
    %c0_14 = arith.constant 0 : index
    %c0_15 = arith.constant 0 : index
    %45 = vector.load %arg1[%c0_13, %c0_14, %c0_15] : memref<3x64x128xbf16, #tpu.memory_space<vmem>>, vector<1x64x128xbf16>
    %46 = vector.shape_cast %45 : vector<1x64x128xbf16> to vector<64x128xbf16>
    %cst_16 = arith.constant dense<0.000000e+00> : vector<32x128xf32>
    %47 = tpu.matmul %44, %46, %cst_16 {dimension_numbers = #tpu.dot_dimension_numbers<[1], [0], [0], [1], [0, 0, 1, 1], [], []>} : vector<32x64xbf16>, vector<64x128xbf16>, vector<32x128xf32> -> vector<32x128xf32>
    %48 = arith.truncf %0 : vector<32x64xf32> to vector<32x64xbf16>
    %c1 = arith.constant 1 : index
    %c0_17 = arith.constant 0 : index
    %c0_18 = arith.constant 0 : index
    %49 = vector.load %arg1[%c1, %c0_17, %c0_18] : memref<3x64x128xbf16, #tpu.memory_space<vmem>>, vector<1x64x128xbf16>
    %50 = vector.shape_cast %49 : vector<1x64x128xbf16> to vector<64x128xbf16>
    %cst_19 = arith.constant dense<0.000000e+00> : vector<32x128xf32>
    %51 = tpu.matmul %48, %50, %cst_19 {dimension_numbers = #tpu.dot_dimension_numbers<[1], [0], [0], [1], [0, 0, 1, 1], [], []>} : vector<32x64xbf16>, vector<64x128xbf16>, vector<32x128xf32> -> vector<32x128xf32>
    %52 = arith.addf %47, %51 : vector<32x128xf32>
    %53 = arith.truncf %43 : vector<32x64xf32> to vector<32x64xbf16>
    %c2 = arith.constant 2 : index
    %c0_20 = arith.constant 0 : index
    %c0_21 = arith.constant 0 : index
    %54 = vector.load %arg1[%c2, %c0_20, %c0_21] : memref<3x64x128xbf16, #tpu.memory_space<vmem>>, vector<1x64x128xbf16>
    %55 = vector.shape_cast %54 : vector<1x64x128xbf16> to vector<64x128xbf16>
    %cst_22 = arith.constant dense<0.000000e+00> : vector<32x128xf32>
    %56 = tpu.matmul %53, %55, %cst_22 {dimension_numbers = #tpu.dot_dimension_numbers<[1], [0], [0], [1], [0, 0, 1, 1], [], []>} : vector<32x64xbf16>, vector<64x128xbf16>, vector<32x128xf32> -> vector<32x128xf32>
    %57 = arith.addf %52, %56 : vector<32x128xf32>
    %c0_23 = arith.constant 0 : index
    %c0_24 = arith.constant 0 : index
    %58 = vector.load %arg2[%c0_23, %c0_24] : memref<32x128xf32, #tpu.memory_space<vmem>>, vector<32x128xf32>
    %59 = arith.addf %57, %58 : vector<32x128xf32>
    %60 = tpu.iota {dimensions = array<i32: 0>} : vector<32x128xi32>
    %c16_i32_25 = arith.constant 16 : i32
    %c0_i32_26 = arith.constant 0 : i32
    %61 = arith.cmpi eq, %c16_i32_25, %c0_i32_26 : i32
    %c1_i32_27 = arith.constant 1 : i32
    %62 = arith.select %61, %c1_i32_27, %c16_i32_25 : i32
    %63 = vector.broadcast %62 : i32 to vector<32x128xi32>
    %64 = arith.remsi %60, %63 : vector<32x128xi32>
    %c0_i32_28 = arith.constant 0 : i32
    %65 = vector.broadcast %c0_i32_28 : i32 to vector<32x128xi32>
    %66 = arith.cmpi ne, %64, %65 : vector<32x128xi32>
    %c0_i32_29 = arith.constant 0 : i32
    %67 = vector.broadcast %c0_i32_29 : i32 to vector<32x128xi32>
    %68 = arith.cmpi slt, %64, %67 : vector<32x128xi32>
    %c0_i32_30 = arith.constant 0 : i32
    %69 = arith.cmpi slt, %62, %c0_i32_30 : i32
    %70 = vector.broadcast %69 : i1 to vector<32x128xi1>
    %71 = vector.broadcast %70 : vector<32x128xi1> to vector<32x128xi1>
    %72 = arith.xori %68, %71 : vector<32x128xi1>
    %73 = arith.andi %72, %66 : vector<32x128xi1>
    %74 = vector.broadcast %62 : i32 to vector<32x128xi32>
    %75 = arith.addi %64, %74 : vector<32x128xi32>
    %76 = arith.select %73, %75, %64 : vector<32x128xi1>, vector<32x128xi32>
    %c0_i32_31 = arith.constant 0 : i32
    %77 = vector.broadcast %c0_i32_31 : i32 to vector<32x128xi32>
    %78 = arith.cmpi eq, %76, %77 : vector<32x128xi32>
    %c1_i32_32 = arith.constant 1 : i32
    %79 = tpu.dynamic_rotate %59 by %c1_i32_32 dim 0 : vector<32x128xf32>, i32 -> vector<32x128xf32>
    %cst_33 = arith.constant 0.000000e+00 : f32
    %80 = vector.broadcast %cst_33 : f32 to vector<32x128xf32>
    %81 = arith.select %78, %80, %79 : vector<32x128xi1>, vector<32x128xf32>
    %c16_i32_34 = arith.constant 16 : i32
    %c0_i32_35 = arith.constant 0 : i32
    %82 = arith.cmpi eq, %c16_i32_34, %c0_i32_35 : i32
    %c1_i32_36 = arith.constant 1 : i32
    %83 = arith.select %82, %c1_i32_36, %c16_i32_34 : i32
    %84 = vector.broadcast %83 : i32 to vector<32x128xi32>
    %85 = arith.remsi %60, %84 : vector<32x128xi32>
    %c0_i32_37 = arith.constant 0 : i32
    %86 = vector.broadcast %c0_i32_37 : i32 to vector<32x128xi32>
    %87 = arith.cmpi ne, %85, %86 : vector<32x128xi32>
    %c0_i32_38 = arith.constant 0 : i32
    %88 = vector.broadcast %c0_i32_38 : i32 to vector<32x128xi32>
    %89 = arith.cmpi slt, %85, %88 : vector<32x128xi32>
    %c0_i32_39 = arith.constant 0 : i32
    %90 = arith.cmpi slt, %83, %c0_i32_39 : i32
    %91 = vector.broadcast %90 : i1 to vector<32x128xi1>
    %92 = vector.broadcast %91 : vector<32x128xi1> to vector<32x128xi1>
    %93 = arith.xori %89, %92 : vector<32x128xi1>
    %94 = arith.andi %93, %87 : vector<32x128xi1>
    %95 = vector.broadcast %83 : i32 to vector<32x128xi32>
    %96 = arith.addi %85, %95 : vector<32x128xi32>
    %97 = arith.select %94, %96, %85 : vector<32x128xi1>, vector<32x128xi32>
    %c15_i32_40 = arith.constant 15 : i32
    %98 = vector.broadcast %c15_i32_40 : i32 to vector<32x128xi32>
    %99 = arith.cmpi eq, %97, %98 : vector<32x128xi32>
    %c31_i32_41 = arith.constant 31 : i32
    %100 = tpu.dynamic_rotate %59 by %c31_i32_41 dim 0 : vector<32x128xf32>, i32 -> vector<32x128xf32>
    %cst_42 = arith.constant 0.000000e+00 : f32
    %101 = vector.broadcast %cst_42 : f32 to vector<32x128xf32>
    %102 = arith.select %99, %101, %100 : vector<32x128xi1>, vector<32x128xf32>
    %103 = arith.truncf %81 : vector<32x128xf32> to vector<32x128xbf16>
    %c0_43 = arith.constant 0 : index
    %c0_44 = arith.constant 0 : index
    %c0_45 = arith.constant 0 : index
    %104 = vector.load %arg3[%c0_43, %c0_44, %c0_45] : memref<3x128x64xbf16, #tpu.memory_space<vmem>>, vector<1x128x64xbf16>
    %105 = vector.shape_cast %104 : vector<1x128x64xbf16> to vector<128x64xbf16>
    %cst_46 = arith.constant dense<0.000000e+00> : vector<32x64xf32>
    %106 = tpu.matmul %103, %105, %cst_46 {dimension_numbers = #tpu.dot_dimension_numbers<[1], [0], [0], [1], [0, 0, 1, 1], [], []>} : vector<32x128xbf16>, vector<128x64xbf16>, vector<32x64xf32> -> vector<32x64xf32>
    %107 = arith.truncf %59 : vector<32x128xf32> to vector<32x128xbf16>
    %c1_47 = arith.constant 1 : index
    %c0_48 = arith.constant 0 : index
    %c0_49 = arith.constant 0 : index
    %108 = vector.load %arg3[%c1_47, %c0_48, %c0_49] : memref<3x128x64xbf16, #tpu.memory_space<vmem>>, vector<1x128x64xbf16>
    %109 = vector.shape_cast %108 : vector<1x128x64xbf16> to vector<128x64xbf16>
    %cst_50 = arith.constant dense<0.000000e+00> : vector<32x64xf32>
    %110 = tpu.matmul %107, %109, %cst_50 {dimension_numbers = #tpu.dot_dimension_numbers<[1], [0], [0], [1], [0, 0, 1, 1], [], []>} : vector<32x128xbf16>, vector<128x64xbf16>, vector<32x64xf32> -> vector<32x64xf32>
    %111 = arith.addf %106, %110 : vector<32x64xf32>
    %112 = arith.truncf %102 : vector<32x128xf32> to vector<32x128xbf16>
    %c2_51 = arith.constant 2 : index
    %c0_52 = arith.constant 0 : index
    %c0_53 = arith.constant 0 : index
    %113 = vector.load %arg3[%c2_51, %c0_52, %c0_53] : memref<3x128x64xbf16, #tpu.memory_space<vmem>>, vector<1x128x64xbf16>
    %114 = vector.shape_cast %113 : vector<1x128x64xbf16> to vector<128x64xbf16>
    %cst_54 = arith.constant dense<0.000000e+00> : vector<32x64xf32>
    %115 = tpu.matmul %112, %114, %cst_54 {dimension_numbers = #tpu.dot_dimension_numbers<[1], [0], [0], [1], [0, 0, 1, 1], [], []>} : vector<32x128xbf16>, vector<128x64xbf16>, vector<32x64xf32> -> vector<32x64xf32>
    %116 = arith.addf %111, %115 : vector<32x64xf32>
    %cst_55 = arith.constant 0.000000e+00 : f32
    %117 = vector.broadcast %cst_55 : f32 to vector<32x64xf32>
    %118 = arith.maximumf %116, %117 : vector<32x64xf32>
    %119 = arith.truncf %118 : vector<32x64xf32> to vector<32x64xbf16>
    %c0_56 = arith.constant 0 : index
    %c0_57 = arith.constant 0 : index
    %120 = vector.load %arg4[%c0_56, %c0_57] : memref<64x128xbf16, #tpu.memory_space<vmem>>, vector<64x128xbf16>
    %cst_58 = arith.constant dense<0.000000e+00> : vector<32x128xf32>
    %121 = tpu.matmul %119, %120, %cst_58 {dimension_numbers = #tpu.dot_dimension_numbers<[1], [0], [0], [1], [0, 0, 1, 1], [], []>} : vector<32x64xbf16>, vector<64x128xbf16>, vector<32x128xf32> -> vector<32x128xf32>
    %cst_59 = arith.constant 0.000000e+00 : f32
    %122 = vector.broadcast %cst_59 : f32 to vector<32x128xf32>
    %123 = arith.maximumf %121, %122 : vector<32x128xf32>
    %c0_60 = arith.constant 0 : index
    %c0_61 = arith.constant 0 : index
    %124 = vector.load %arg5[%c0_60, %c0_61] : memref<32x128xf32, #tpu.memory_space<vmem>>, vector<32x128xf32>
    %125 = arith.mulf %123, %124 : vector<32x128xf32>
    %126 = arith.addf %59, %125 : vector<32x128xf32>
    %c0_62 = arith.constant 0 : index
    %c0_63 = arith.constant 0 : index
    %127 = vector.load %arg6[%c0_62, %c0_63] : memref<32x128xf32, #tpu.memory_space<vmem>>, vector<32x128xf32>
    tpu.vector_store %arg6[%c0_62, %c0_63], %126 {strides = array<i32>} : memref<32x128xf32, #tpu.memory_space<vmem>>, vector<32x128xf32>,
    return
  }
}

</mosaic_0001>

<bundles_post_ra>
// kernel: sequential_conv_adapter.1
= control target key start
LH: loop header
LB: loop body
LE: loop exit
PB: predicated region body
PF: predicated region fallthrough
CT: control target
= control target key end

     0   :  { %v28_v0 = vlaneseq  ;;  %vm160_vm4 = vcmask 523264   ;;  %vm952_vm8 = vmmov 1   ;;  %s1269_s1 = inlined_call_operand.vmem [shape: bf16[3,64,128], index: 1, kind: input, shape index: {}]   ;;  %s1270_s0 = inlined_call_operand.vmem [shape: f32[32,64], index: 0, kind: input, shape index: {}]   ;;  %s1271_s3 = inlined_call_operand.vmem [shape: bf16[3,128,64], index: 3, kind: input, shape index: {}]   ;;  %s1272_s2 = inlined_call_operand.vmem [shape: f32[32,128], index: 2, kind: input, shape index: {}]   ;;  %s1273_s4 = inlined_call_operand.vmem [shape: bf16[64,128], index: 4, kind: input, shape index: {}]   ;;  %s1274_s5 = inlined_call_operand.vmem [shape: f32[32,128], index: 5, kind: input, shape index: {}]   ;;  %s1275_s6 = inlined_call_operand.vmem [shape: f32[32,128], index: 6, kind: output, shape index: {}]  }
   0x1   :  { %v918_v1 = vld [vmem:[%s1269_s1 + $0x38] sm:$0xff]  ;;  %v917_v5 = vld [vmem:[%s1269_s1 + $0x30] sm:$0xff]  ;;  %v24_v10 = vld [vmem:[%s1270_s0] sm:$0xff] }
   0x2   :  { %v914_v2 = vld [vmem:[%s1269_s1 + $0x18] sm:$0xff]  ;;  %v997_v4 = vshrl.u32 %v28_v0, 7  ;;  %171 = vmatpush.bf16.msra.mxu0 %v918_v1  ;;  %v913_v6 = vld [vmem:[%s1269_s1 + $0x10] sm:$0xff]  ;;  %v25_v11 = vld [vmem:[%s1270_s0 + $0x8] sm:$0xff]  ;;  %v85_v13 = vrot.slane %v24_v10, 7  ;;  %v102_v23 = vrot.slane %v24_v10, 1 }
   0x3   :  { %v922_v3 = vld [vmem:[%s1269_s1 + $0x58] sm:$0xff]  ;;  %220 = vmatpush.bf16.msra.mxu1 %v914_v2  ;;  %v921_v7 = vld [vmem:[%s1269_s1 + $0x50] sm:$0xff]  ;;  %v103_v14 = vrot.slane %v25_v11, 1  ;;  %v916_v17 = vld [vmem:[%s1269_s1 + $0x28] sm:$0xff]  ;;  %v86_v19 = vrot.slane %v25_v11, 7  ;;  %v125_v38 = vpack.c.bf16 %v25_v11, %v24_v10 }
   0x4   :  { %280 = vmatpush.bf16.msra.mxu2 %v922_v3  ;;  %v37_v8 = vand.u32 15, %v997_v4  ;;  %v30_v9 = vadd.s32 8, %v997_v4  ;;  %v1019_v12 = vld [vmem:[%s1270_s0 + $0x18] sm:$0xff]  ;;  %vm89_vm0 = vcmp.lt.s32.totalorder %v997_v4, 1  ;;  %v26_v15 = vld [vmem:[%s1270_s0 + $0x10] sm:$0xff]  ;;  %v912_v18 = vld [vmem:[%s1269_s1 + $0x8] sm:$0xff] }
   0x5   :  { %v938_v16 = vld [vmem:[%s1271_s3 + $0x78] sm:$0xff]  ;;  %v88_v20 = vrot.slane %v1019_v12, 7  ;;  %vm106_vm1 = vcmp.lt.s32.totalorder %v997_v4, 7  ;;  %v920_v22 = vld [vmem:[%s1269_s1 + $0x48] sm:$0xff]  ;;  %v104_v25 = vrot.slane %v26_v15, 1  ;;  %v937_v26 = vld [vmem:[%s1271_s3 + $0x70] sm:$0xff]  ;;  %v92_v32 = vsel %vm89_vm0, %v85_v13, %v86_v19 }
   0x6   :  { %172 = vmatpush.bf16.msra.mxu0 %v917_v5  ;;  %v44_v21 = vand.u32 15, %v30_v9  ;;  %vm1039_vm2 = vcmp.eq.s32.totalorder %v37_v8, 0  ;;  %416 = vmatpush.bf16.msra.mxu3 %v938_v16  ;;  %v915_v30 = vld [vmem:[%s1269_s1 + $0x20] sm:$0xff]  ;;  %v109_v35 = vsel %vm106_vm1, %v102_v23, %v103_v14  ;;  %v936_v37 = vld [vmem:[%s1271_s3 + $0x68] sm:$0xff]  ;;  %v31_v41 = vadd.s32 16, %v997_v4  ;;  %v946_v58 = vld [vmem:[%s1271_s3 + $0xb8] sm:$0xff] }
   0x7   :  { %221 = vmatpush.bf16.msra.mxu1 %v913_v6  ;;  %v93_v27 = vsel %vm89_vm0, %v88_v20, %v85_v13  ;;  %v108_v29 = vsel %vm106_vm1, %v103_v14, %v104_v25  ;;  %v911_v31 = vld [vmem:[%s1269_s1] sm:$0xff]  ;;  %v32_v42 = vadd.s32 24, %v997_v4  ;;  %v87_v44 = vrot.slane %v26_v15, 7  ;;  %v945_v60 = vld [vmem:[%s1271_s3 + $0xb0] sm:$0xff]  ;;  %v934_v61 = vld [vmem:[%s1271_s3 + $0x58] sm:$0xff] }
   0x8   :  { %281 = vmatpush.bf16.msra.mxu2 %v921_v7  ;;  %vm1048_vm3 = vcmp.eq.s32.totalorder %v44_v21, 15  ;;  %v94_v33 = vsel %vm1039_vm2, 0.0, %v93_v27  ;;  %v919_v34 = vld [vmem:[%s1269_s1 + $0x40] sm:$0xff]  ;;  %v51_v43 = vand.u32 15, %v31_v41  ;;  %v105_v46 = vrot.slane %v1019_v12, 1  ;;  %v930_v62 = vld [vmem:[%s1271_s3 + $0x38] sm:$0xff]  ;;  %vm829_vm10 = vmneg %vm1039_vm2 }
   0x9   :  { %v112_v36 = vsel %vm1048_vm3, 0.0, %v108_v29  ;;  %v115_v39 = vpack.c.bf16 %v92_v32, %v94_v33  ;;  %v58_v45 = vand.u32 15, %v32_v42  ;;  %v91_v48 = vsel %vm89_vm0, %v86_v19, %v87_v44  ;;  %v935_v59 = vld [vmem:[%s1271_s3 + $0x60] sm:$0xff]  ;;  %v944_v63 = vld [vmem:[%s1271_s3 + $0xa8] sm:$0xff]  ;;  %v933_v0 = vld [vmem:[%s1271_s3 + $0x50] sm:$0xff] }
   0xa   :  { %173 = vmatpush.bf16.msra.mxu0 %v916_v17  ;;  %417 = vmatpush.bf16.msra.mxu3 %v937_v26  ;;  %v235_v40 = vpack.c.bf16 %v112_v36, %v109_v35  ;;  %vm1080_vm5 = vcmp.eq.s32.totalorder %v51_v43, 0  ;;  %v110_v50 = vsel %vm106_vm1, %v105_v46, %v102_v23  ;;  %v90_v51 = vsel %vm89_vm0, %v87_v44, %v88_v20  ;;  %v929_v1 = vld [vmem:[%s1271_s3 + $0x30] sm:$0xff]  ;;  %v943_v2 = vld [vmem:[%s1271_s3 + $0xa0] sm:$0xff]  ;;  %v932_v3 = vld [vmem:[%s1271_s3 + $0x48] sm:$0xff] }
   0xb   :  { %222 = vmatpush.bf16.msra.mxu1 %v912_v18  ;;  %vm1086_vm6 = vcmp.eq.s32.totalorder %v58_v45, 15  ;;  %v96_v52 = vsel %vm1080_vm5, 0.0, %v91_v48  ;;  %v107_v53 = vsel %vm106_vm1, %v104_v25, %v105_v46  ;;  %v126_v55 = vpack.c.bf16 %v1019_v12, %v26_v15  ;;  %v928_v5 = vld [vmem:[%s1271_s3 + $0x28] sm:$0xff]  ;;  %v942_v6 = vld [vmem:[%s1271_s3 + $0x98] sm:$0xff]  ;;  %v931_v7 = vld [vmem:[%s1271_s3 + $0x40] sm:$0xff] }
   0xc   :  { %282 = vmatpush.bf16.msra.mxu2 %v920_v22  ;;  %v114_v54 = vsel %vm1086_vm6, 0.0, %v110_v50  ;;  %v116_v56 = vpack.c.bf16 %v90_v51, %v96_v52  ;;  %v927_v8 = vld [vmem:[%s1271_s3 + $0x20] sm:$0xff]  ;;  %v941_v9 = vld [vmem:[%s1271_s3 + $0x90] sm:$0xff]  ;;  %v926_v10 = vld [vmem:[%s1271_s3 + $0x18] sm:$0xff] }
   0xd   :  { %v236_v57 = vpack.c.bf16 %v114_v54, %v107_v53  ;;  %v940_v11 = vld [vmem:[%s1271_s3 + $0x88] sm:$0xff]  ;;  %v925_v12 = vld [vmem:[%s1271_s3 + $0x10] sm:$0xff]  ;;  %v939_v13 = vld [vmem:[%s1271_s3 + $0x80] sm:$0xff] }
   0xe   :  { %174 = vmatpush.bf16.msra.mxu0 %v915_v30  ;;  %418 = vmatpush.bf16.msra.mxu3 %v936_v37  ;;  %v924_v16 = vld [vmem:[%s1271_s3 + $0x8] sm:$0xff]  ;;  %v923_v17 = vld [vmem:[%s1271_s3] sm:$0xff]  ;;  %v301_v37 = vld [vmem:[%s1272_s2 + $0x10] sm:$0xff] }
   0xf   :  { %223 = vmatpush.bf16.msra.mxu1 %v911_v31  ;;  %v299_v25 = vld [vmem:[%s1272_s2] sm:$0xff]  ;;  %v300_v27 = vld [vmem:[%s1272_s2 + $0x8] sm:$0xff]  ;;  %vm885_vm7 = vmneg %vm1048_vm3 }
  0x10   :  { %283 = vmatpush.bf16.msra.mxu2 %v919_v34  ;;  %vm886_vm9 = vmpackc.low %vm885_vm7, %vm952_vm8  ;;  %v302_v28 = vld [vmem:[%s1272_s2 + $0x18] sm:$0xff]  ;;  %v948_v47 = vld [vmem:[%s1273_s4 + $0x8] sm:$0xff] }
  0x11   :  { %703 = vmatmul.msk.bf16.vlgmr.msra.gmra.mxu0 %vm160_vm4, %v125_v38  ;;  %vm830_vm11 = vmpackc.low %vm952_vm8, %vm829_vm10 }
  0x12   :  { %721 = vmatmul.msk.bf16.vlgmr.msra.gmra.mxu1 %vm160_vm4, %v115_v39  ;;  %419 = vmatpush.bf16.msra.mxu3 %v935_v59  ;;  %v950_v39 = vld [vmem:[%s1273_s4 + $0x18] sm:$0xff]  ;;  %vm889_vm12 = vmneg %vm1086_vm6 }
  0x13   :  { %747 = vmatmul.msk.bf16.vlgmr.msra.gmra.mxu2 %vm160_vm4, %v235_v40  ;;  %569 = vmatpush.bf16.msrb.mxu1 %v946_v58  ;;  %vm890_vm13 = vmpackc.low %vm889_vm12, %vm952_vm8 }
  0x14   :  { %483 = vmatpush.bf16.msrb.mxu0 %v930_v62  ;;  %640 = vmatpush.bf16.msrb.mxu2 %v950_v39  ;;  %vm833_vm14 = vmneg %vm1080_vm5 }
  0x15   :  { %vm834_vm15 = vmpackc.low %vm952_vm8, %vm833_vm14 }
  0x16   :  { %420 = vmatpush.bf16.msra.mxu3 %v934_v61 }
  0x17   :  { %570 = vmatpush.bf16.msrb.mxu1 %v945_v60 }
  0x18   :  { %484 = vmatpush.bf16.msrb.mxu0 %v929_v1 }
  0x1a   :  { %421 = vmatpush.bf16.msra.mxu3 %v933_v0 }
  0x1b   :  { %571 = vmatpush.bf16.msrb.mxu1 %v944_v63 }
  0x1c   :  { %485 = vmatpush.bf16.msrb.mxu0 %v928_v5  ;;  %v949_v5 = vld [vmem:[%s1273_s4 + $0x10] sm:$0xff] }
  0x1d   :  { %641 = vmatpush.bf16.msrb.mxu2 %v949_v5 }
  0x1e   :  { %422 = vmatpush.bf16.msra.mxu3 %v932_v3 }
  0x1f   :  { %572 = vmatpush.bf16.msrb.mxu1 %v943_v2 }
  0x20   :  { %486 = vmatpush.bf16.msrb.mxu0 %v927_v8 }
  0x21   :  { %704 = vmatmul.msk.bf16.gmra.mxu0 %vm160_vm4, %v126_v55  ;;  %642 = vmatpush.bf16.msrb.mxu2 %v948_v47 }
  0x22   :  { %722 = vmatmul.msk.bf16.gmra.mxu1 %vm160_vm4, %v116_v56  ;;  %423 = vmatpush.bf16.msra.mxu3 %v931_v7 }
  0x23   :  { %748 = vmatmul.msk.bf16.gmra.mxu2 %vm160_vm4, %v236_v57  ;;  %573 = vmatpush.bf16.msrb.mxu1 %v942_v6  ;;  %v947_v6 = vld [vmem:[%s1273_s4] sm:$0xff] }
  0x24   :  { %487 = vmatpush.bf16.msrb.mxu0 %v926_v10 }
  0x25   :  { %643 = vmatpush.bf16.msrb.mxu2 %v947_v6 }
  0x27   :  { %574 = vmatpush.bf16.msrb.mxu1 %v941_v9 }
  0x28   :  { %488 = vmatpush.bf16.msrb.mxu0 %v925_v12 }
  0x2b   :  { %575 = vmatpush.bf16.msrb.mxu1 %v940_v11 }
  0x2c   :  { %489 = vmatpush.bf16.msrb.mxu0 %v924_v16 }
  0x2f   :  { %576 = vmatpush.bf16.msrb.mxu1 %v939_v13 }
  0x30   :  { %490 = vmatpush.bf16.msrb.mxu0 %v923_v17 }
  0x8e   :  { %v176_v14 = vpop.f32.mrf.mxu0 }
  0x8f   :  { %v225_v15 = vpop.f32.mrf.mxu1 }
  0x90   :  { %v226_v21 = vadd.f32 %v225_v15, %v176_v14 }
  0x96   :  { %v285_v18 = vpop.f32.mrf.mxu2  ;;  %v178_v19 = vpop.f32.mrf.mxu0 }
  0x97   :  { %v227_v20 = vpop.f32.mrf.mxu1  ;;  %v295_v22 = vadd.f32 %v285_v18, %v226_v21 }
  0x98   :  { %v228_v23 = vadd.f32 %v227_v20, %v178_v19 }
  0x99   :  { %v1173_v32 = vadd.f32 %v299_v25, %v295_v22 }
  0x9b   :  { %v319_v44 = vrot.slane %v1173_v32, 1  ;;  %v307_v56 = vrot.slane %v1173_v32, 7 }
  0x9e   :  { %v287_v26 = vpop.f32.mrf.mxu2  ;;  %v181_v30 = vpop.f32.mrf.mxu0 }
  0x9f   :  { %v296_v29 = vadd.f32 %v287_v26, %v228_v23  ;;  %v230_v31 = vpop.f32.mrf.mxu1 }
  0xa0   :  { %v231_v34 = vadd.f32 %v230_v31, %v181_v30 }
  0xa1   :  { %v1175_v33 = vadd.f32 %v300_v27, %v296_v29 }
  0xa3   :  { %v349_v35 = vpack.c.bf16 %v1175_v33, %v1173_v32  ;;  %v320_v40 = vrot.slane %v1175_v33, 1  ;;  %v308_v54 = vrot.slane %v1175_v33, 7 }
  0xa5   :  { %424 = vmatmul.bf16.vlgmr.msra.gmra.mxu3 %v349_v35  ;;  %v325_v50 = vsel %vm106_vm1, %v319_v44, %v320_v40  ;;  %v313_v59 = vsel %vm89_vm0, %v307_v56, %v308_v54 }
  0xa6   :  { %v290_v36 = vpop.f32.mrf.mxu2  ;;  %v183_v42 = vpop.f32.mrf.mxu0 }
  0xa7   :  { %v297_v38 = vadd.f32 %v290_v36, %v231_v34  ;;  %v232_v43 = vpop.f32.mrf.mxu1 }
  0xa8   :  { %v233_v46 = vadd.f32 %v232_v43, %v183_v42  ;;  %v660_v43 = vld [vmem:[%s1274_s5 + $0x8] sm:$0xff] }
  0xa9   :  { %v1186_v41 = vadd.f32 %v301_v37, %v297_v38  ;;  %v659_v37 = vld [vmem:[%s1274_s5] sm:$0xff] }
  0xab   :  { %v321_v45 = vrot.slane %v1186_v41, 1  ;;  %v309_v1 = vrot.slane %v1186_v41, 7 }
  0xad   :  { %v324_v48 = vsel %vm106_vm1, %v320_v40, %v321_v45  ;;  %v312_v49 = vsel %vm89_vm0, %v308_v54, %v309_v1 }
  0xae   :  { %v292_v51 = vpop.f32.mrf.mxu2  ;;  %v887_v52 = vpack.c.bf16 %v324_v48, %v325_v50 }
  0xaf   :  { %v298_v53 = vadd.f32 %v292_v51, %v233_v46 }
  0xb0   :  { %888 = vmatmul.msk.bf16.vlgmr.msrb.gmra.mxu1 %vm886_vm9, %v887_v52 }
  0xb1   :  { %v1201_v55 = vadd.f32 %v302_v28, %v298_v53 }
  0xb3   :  { %v310_v57 = vrot.slane %v1201_v55, 7  ;;  %v350_v58 = vpack.c.bf16 %v1201_v55, %v1186_v41  ;;  %v322_v24 = vrot.slane %v1201_v55, 1 }
  0xb5   :  { %429 = vmatmul.bf16.gmra.mxu3 %v350_v58  ;;  %v314_v60 = vsel %vm89_vm0, %v310_v57, %v307_v56  ;;  %v323_v62 = vsel %vm106_vm1, %v321_v45, %v322_v24  ;;  %v326_v63 = vsel %vm106_vm1, %v322_v24, %v319_v44  ;;  %v311_v2 = vsel %vm89_vm0, %v309_v1, %v310_v57 }
  0xb6   :  { %v831_v61 = vpack.c.bf16 %v313_v59, %v314_v60  ;;  %v891_v0 = vpack.c.bf16 %v326_v63, %v323_v62  ;;  %v835_v3 = vpack.c.bf16 %v311_v2, %v312_v49 }
  0xb8   :  { %832 = vmatmul.msk.bf16.vlgmr.msrb.gmra.mxu0 %vm830_vm11, %v831_v61 }
  0xc0   :  { %892 = vmatmul.msk.bf16.gmra.mxu1 %vm890_vm13, %v891_v0 }
  0xc8   :  { %836 = vmatmul.msk.bf16.gmra.mxu0 %vm834_vm15, %v835_v3 }
 0x128   :  { %v425_v4 = vpop.f32.mrf.mxu3 }
 0x12d   :  { %v578_v7 = vpop.f32.mrf.mxu1 }
 0x130   :  { %v427_v9 = vpop.f32.mrf.mxu3 }
 0x135   :  { %v492_v8 = vpop.f32.mrf.mxu0  ;;  %v580_v11 = vpop.f32.mrf.mxu1 }
 0x136   :  { %v493_v10 = vadd.f32 %v492_v8, %v425_v4 }
 0x138   :  { %v588_v13 = vadd.f32 %v578_v7, %v493_v10  ;;  %v430_v18 = vpop.f32.mrf.mxu3 }
 0x13a   :  { %v592_v16 = vmax.f32 %v588_v13, 0.0 }
 0x13d   :  { %v494_v12 = vpop.f32.mrf.mxu0  ;;  %v583_v20 = vpop.f32.mrf.mxu1 }
 0x13e   :  { %v495_v14 = vadd.f32 %v494_v12, %v427_v9 }
 0x140   :  { %v589_v15 = vadd.f32 %v580_v11, %v495_v14  ;;  %v432_v23 = vpop.f32.mrf.mxu3 }
 0x142   :  { %v593_v17 = vmax.f32 %v589_v15, 0.0 }
 0x144   :  { %v596_v19 = vpack.c.bf16 %v593_v17, %v592_v16 }
 0x145   :  { %v497_v21 = vpop.f32.mrf.mxu0  ;;  %v585_v29 = vpop.f32.mrf.mxu1 }
 0x146   :  { %909 = vmatmul.msk.bf16.vlgmr.msrb.gmra.mxu2 %vm160_vm4, %v596_v19  ;;  %v498_v22 = vadd.f32 %v497_v21, %v430_v18 }
 0x148   :  { %v590_v26 = vadd.f32 %v583_v20, %v498_v22 }
 0x14a   :  { %v594_v31 = vmax.f32 %v590_v26, 0.0 }
 0x14d   :  { %v499_v25 = vpop.f32.mrf.mxu0 }
 0x14e   :  { %v500_v27 = vadd.f32 %v499_v25, %v432_v23 }
 0x150   :  { %v591_v30 = vadd.f32 %v585_v29, %v500_v27 }
 0x152   :  { %v595_v34 = vmax.f32 %v591_v30, 0.0 }
 0x154   :  { %v597_v35 = vpack.c.bf16 %v595_v34, %v594_v31 }
 0x156   :  { %910 = vmatmul.msk.bf16.gmra.mxu2 %vm160_vm4, %v597_v35 }
 0x1c9   :  { %v645_v36 = vpop.f32.mrf.mxu2 }
 0x1ca   :  { %v655_v38 = vmax.f32 %v645_v36, 0.0 }
 0x1cc   :  { %v663_v39 = vmul.f32 %v659_v37, %v655_v38 }
 0x1ce   :  { %v667_v40 = vadd.f32 %v663_v39, %v1173_v32  ;;  %v661_v32 = vld [vmem:[%s1274_s5 + $0x10] sm:$0xff] }
 0x1d0   :  { %671 = vst [vmem:[%s1275_s6] sm:$0xff] %v667_v40 }
 0x1d1   :  { %v647_v42 = vpop.f32.mrf.mxu2 }
 0x1d2   :  { %v656_v44 = vmax.f32 %v647_v42, 0.0 }
 0x1d4   :  { %v664_v45 = vmul.f32 %v660_v43, %v656_v44 }
 0x1d6   :  { %v668_v46 = vadd.f32 %v664_v45, %v1175_v33  ;;  %v662_v33 = vld [vmem:[%s1274_s5 + $0x18] sm:$0xff] }
 0x1d8   :  { %672 = vst [vmem:[%s1275_s6 + $0x8] sm:$0xff] %v668_v46 }
 0x1d9   :  { %v650_v48 = vpop.f32.mrf.mxu2 }
 0x1da   :  { %v657_v50 = vmax.f32 %v650_v48, 0.0 }
 0x1dc   :  { %v665_v51 = vmul.f32 %v661_v32, %v657_v50 }
 0x1de   :  { %v669_v28 = vadd.f32 %v665_v51, %v1186_v41 }
 0x1e0   :  { %673 = vst [vmem:[%s1275_s6 + $0x10] sm:$0xff] %v669_v28 }
 0x1e1   :  { %v652_v52 = vpop.f32.mrf.mxu2 }
 0x1e2   :  { %v658_v53 = vmax.f32 %v652_v52, 0.0 }
 0x1e4   :  { %v666_v54 = vmul.f32 %v662_v33, %v658_v53 }
 0x1e6   :  { %v670_v56 = vadd.f32 %v666_v54, %v1201_v55 }
 0x1e8   :  { %674 = vst [vmem:[%s1275_s6 + $0x18] sm:$0xff] %v670_v56 }

</bundles_post_ra>
